<compile_context>
chip_gen: v7x
topology: tpu7x:2x2x1
jax: 0.10.0
libtpu: 0.0.40
codegen_flags: <defaults>
</compile_context>

<pallas_src>
import functools

import jax
import jax.numpy as jnp
from jax.experimental import pallas as pl
from jax.experimental.pallas import tpu as pltpu


# ----------------------------------------------------------------------------
# Kernels: each grid step writes its own partial CE sum to a (1,1) SMEM block.
# ----------------------------------------------------------------------------
def _ce_rows_kernel(logits_ref, targets_ref, partial_ref, *, n_valid_rows):
    """Generic path: one original row per kernel row (class dim on lanes).

    logits_ref / targets_ref : (TN, S) native-dtype VMEM blocks
    partial_ref              : (1, 1)  f32 SMEM block (per-block CE partial sum)
    """
    i = pl.program_id(0)
    x = logits_ref[...].astype(jnp.float32)            # (TN, S) in-VMEM upcast
    t = targets_ref[...].astype(jnp.float32)
    tn = x.shape[0]

    # [R1] ragged last block: rows past n_valid_rows hold unspecified data.
    row = i * tn + jax.lax.broadcasted_iota(jnp.int32, (tn, 1), 0)
    valid = row < n_valid_rows                          # (TN, 1)

    # [R8] CE_row = (logsumexp + rmax) * sum(t) - sum(t * x)
    #            == -sum_j t_j * log_softmax(x)_j       (no logp materialized)
    rmax = jnp.max(x, axis=-1, keepdims=True)           # (TN, 1)
    esum = jnp.sum(jnp.exp(x - rmax), axis=-1, keepdims=True)
    tsum = jnp.sum(t, axis=-1, keepdims=True)
    txsum = jnp.sum(t * x, axis=-1, keepdims=True)
    ce = (jnp.log(esum) + rmax) * tsum - txsum          # (TN, 1)

    partial_ref[0, 0] = jnp.sum(jnp.where(valid, ce, 0.0))


def _ce_dense_kernel(logits_ref, targets_ref, partial_ref, *, n_valid_rows, s, k):
    """Lane-dense path [R3]: each kernel row packs k original rows (k*s lanes).

    logits_ref / targets_ref : (TN, k*s) native-dtype VMEM blocks
    partial_ref              : (1, 1)    f32 SMEM block
    """
    i = pl.program_id(0)
    x = logits_ref[...].astype(jnp.float32)             # (TN, k*s)
    t = targets_ref[...].astype(jnp.float32)
    tn, width = x.shape

    row = i * tn + jax.lax.broadcasted_iota(jnp.int32, (tn, 1), 0)
    valid = row < n_valid_rows                          # (TN, 1) dense-row mask

    # Per-dense-row stabilizer (max over the k packed rows).  log-softmax is
    # shift-invariant per segment for any per-segment constant, so this is
    # mathematically exact; numerically exact unless logits of rows packed
    # together differ by > ~85 (f32 exp underflow) -- documented trade-off.
    c = jnp.max(x, axis=-1, keepdims=True)              # (TN, 1)
    e = jnp.exp(x - c)                                  # (TN, k*s)

    # Segment-indicator matrix (k*s, k): column g selects lanes [g*s,(g+1)*s).
    # Built with iota + compares (no integer division), negligible size.
    j_idx = jax.lax.broadcasted_iota(jnp.int32, (width, k), 0)
    g_idx = jax.lax.broadcasted_iota(jnp.int32, (width, k), 1)
    g_lo = g_idx * s
    g_mat = ((j_idx >= g_lo) & (j_idx < g_lo + s)).astype(jnp.float32)

    # Segmented sums on the otherwise-idle MXU (free slot-wise).
    esum = jnp.dot(e, g_mat, preferred_element_type=jnp.float32)   # (TN, k)
    tsum = jnp.dot(t, g_mat, preferred_element_type=jnp.float32)   # (TN, k)

    ce_seg = (jnp.log(esum) + c) * tsum                 # (TN, k)
    part1 = jnp.sum(jnp.where(valid, ce_seg, 0.0))
    part2 = jnp.sum(jnp.where(valid, t * x, 0.0))       # sum_j t_j * x_j
    partial_ref[0, 0] = part1 - part2


# ----------------------------------------------------------------------------
# Wrapper
# ----------------------------------------------------------------------------
def _vmem_budget_bytes():
    """[R2] Per-generation scoped-VMEM budget for this kernel's working set."""
    try:
        kind = jax.devices()[0].device_kind.lower()
    except Exception:  # pragma: no cover
        kind = ""
    if "v5 lite" in kind or "v5e" in kind or "v5lite" in kind:
        return 12 << 20        # v5e: 16 MiB default scoped VMEM, slow HBM
    if "v6" in kind:
        return 48 << 20        # v6e: 128 MiB physical -> big blocks
    if "7" in kind:
        return 36 << 20        # v7x: 64 MiB physical / 32 MiB default scoped
    return 12 << 20            # unknown chip: safest


def ordering_loss(pred_step_logits, step_targets, mask, *, tile_rows=None):
    """Masked-average soft-target cross-entropy (OrderingLoss.forward)."""
    b, m, s = pred_step_logits.shape
    n = b * m

    logits2d = pred_step_logits.reshape(n, s)     # native dtype straight in
    targets2d = step_targets.reshape(n, s)
    isz = jnp.dtype(logits2d.dtype).itemsize

    # --- [R3] lane densification via a free row-major reshape ---------------
    k = 1
    if s <= 64:
        cand = 128 // s
        while cand > 1 and n % cand != 0:         # largest k<=128//s dividing n
            cand -= 1
        k = max(cand, 1)
    if k > 1:
        rows, width = n // k, k * s
        logits2d = logits2d.reshape(rows, width)  # contiguous -> no HBM copy
        targets2d = targets2d.reshape(rows, width)
        kernel = functools.partial(_ce_dense_kernel, n_valid_rows=rows, s=s, k=k)
    else:
        rows, width = n, s
        kernel = functools.partial(_ce_rows_kernel, n_valid_rows=rows)

    # --- [R2] padding-aware tile sizing --------------------------------------
    lane_padded = ((width + 127) // 128) * 128    # VMEM rounds lanes up to 128
    n_buf = 2                                     # default double-buffering
    f32_live = 5                                  # live f32 temporaries/kernel
    bytes_per_row = lane_padded * (2 * n_buf * isz + f32_live * 4)
    budget = _vmem_budget_bytes()

    if tile_rows is None:
        tile_rows = max(8, budget // bytes_per_row)
        # [R5] keep >= ~4 grid blocks when there is enough work so the
        # "parallel" axis can be split across v7x's two TensorCores.
        tile_rows = min(tile_rows, max(8, pl.cdiv(rows, 4)))
    tile_rows = int(max(1, min(tile_rows, rows)))
    if tile_rows < rows:
        tile_rows = max(8, (tile_rows // 8) * 8)  # sublane multiple
        tile_rows = min(tile_rows, rows)
    num_blocks = pl.cdiv(rows, tile_rows)
    vmem_limit = int(max(budget, tile_rows * bytes_per_row) + (2 << 20))

    # [R9] advisory cost so XLA overlaps neighbors with this HBM-bound call.
    cost = pl.CostEstimate(
        flops=int(8 * n * s),
        transcendentals=int(n * s + n),
        bytes_accessed=int(2 * n * s * isz + num_blocks * 4),
    )

    # NOTE: pipeline_mode=pl.Buffered(3) on the input specs is a further option
    # if profiling shows exposed DMA at step boundaries (mainly v7x); it costs
    # 50% more input VMEM, so it is left at the default depth-2 pipeline here.
    partials = pl.pallas_call(
        kernel,
        out_shape=jax.ShapeDtypeStruct((num_blocks, 1), jnp.float32),
        grid_spec=pltpu.PrefetchScalarGridSpec(
            num_scalar_prefetch=0,
            grid=(num_blocks,),
            in_specs=[
                pl.BlockSpec((tile_rows, width), lambda i: (i, 0)),
                pl.BlockSpec((tile_rows, width), lambda i: (i, 0)),
            ],
            out_specs=pl.BlockSpec((1, 1), lambda i: (i, 0),
                                   memory_space=pltpu.MemorySpace.SMEM),
        ),
        compiler_params=pltpu.CompilerParams(
            dimension_semantics=("parallel",),
            vmem_limit_bytes=vmem_limit,
        ),
        cost_estimate=cost,
    )(logits2d, targets2d)

    # CrossEntropyLoss(reduction='mean') over the TRUE row count.
    all_step_loss = jnp.sum(partials) / jnp.float32(n)

    # sum(loss * (1-mask)) / sum(1-mask) == loss * inv_sum / inv_sum
    # (scalar loss; NaN when every mask element is 1, same as PyTorch).
    inv_sum = jnp.sum(1.0 - mask.reshape(-1).astype(jnp.float32))
    return all_step_loss * (inv_sum / inv_sum)


def ordering_loss_ref(pred_step_logits, step_targets, mask):
    """Pure-JAX reference mirroring the PyTorch forward."""
    b, m, s = pred_step_logits.shape
    logits = pred_step_logits.reshape(b * m, s).astype(jnp.float32)
    targets = step_targets.reshape(b * m, s).astype(jnp.float32)
    mask_f = mask.reshape(b * m).astype(jnp.float32)
    logp = jax.nn.log_softmax(logits, axis=-1)
    all_step_loss = -jnp.mean(jnp.sum(targets * logp, axis=-1))  # CE 'mean'
    inv = 1.0 - mask_f
    return jnp.sum(all_step_loss * inv) / jnp.sum(inv)


# TODO(synk): OrderingLoss.generate_mask (torch.bernoulli RNG helper) is not
# part of forward() and is intentionally not ported.

if __name__ == "__main__":
    key = jax.random.PRNGKey(0)

    def make_inputs(kk, b, m, s):
        k1, k2, k3 = jax.random.split(kk, 3)
        logits = jax.random.normal(k1, (b, m, s), dtype=jnp.float32)
        targets = jax.nn.softmax(
            jax.random.normal(k2, (b, m, s), dtype=jnp.float32), axis=-1)
        msk = (jax.random.uniform(k3, (b, m)) > 0.5).astype(jnp.float32)
        msk = msk.at[0, 0].set(0.0)   # ensure at least one unmasked step
        return logits, targets, msk

    k1, k2, k3 = jax.random.split(key, 3)
    cases = [
        # (key, (b, m, s), forced tile_rows)
        (k1, (2, 8, 32), None),   # lane-dense path (k=4), single full block
        (k2, (4, 25, 32), 8),     # lane-dense path, 4 blocks, ragged last block
        (k3, (2, 6, 80), 8),      # generic per-row path, ragged last block
    ]
    for kk, (b, m, s), tile in cases:
        logits, targets, msk = make_inputs(kk, b, m, s)
        out = ordering_loss(logits, targets, msk, tile_rows=tile)
        out = jax.block_until_ready(out)
        ref = ordering_loss_ref(logits, targets, msk)
        assert jnp.allclose(out, ref, rtol=1e-4, atol=1e-5), (b, m, s, out, ref)

    print("KERNEL_OK")
</pallas_src>

<mosaic_0001>
module attributes {stable_mosaic.version = 11 : i64} {
  func.func @_ce_dense_kernel(%arg0: i32, %arg1: memref<4x128xf32, #tpu.memory_space<vmem>>, %arg2: memref<4x128xf32, #tpu.memory_space<vmem>>, %arg3: memref<1x1xf32, #tpu.memory_space<smem>>) attributes {dimension_semantics = [#tpu.dimension_semantics<parallel>], iteration_bounds = array<i64: 1>, scalar_prefetch = 0 : i64, scratch_operands = 0 : i64, tpu.core_type = #tpu.core_type<tc>, window_params = [{transform_indices = @transform_0, window_bounds = array<i64: 4, 128>}, {transform_indices = @transform_1, window_bounds = array<i64: 4, 128>}, {transform_indices = @transform_2, window_bounds = array<i64: 1, 1>}]} {
    %c0 = arith.constant 0 : index
    %c0_0 = arith.constant 0 : index
    %0 = vector.load %arg1[%c0, %c0_0] : memref<4x128xf32, #tpu.memory_space<vmem>>, vector<4x128xf32>
    %c0_1 = arith.constant 0 : index
    %c0_2 = arith.constant 0 : index
    %1 = vector.load %arg2[%c0_1, %c0_2] : memref<4x128xf32, #tpu.memory_space<vmem>>, vector<4x128xf32>
    %c4_i32 = arith.constant 4 : i32
    %2 = arith.muli %arg0, %c4_i32 : i32
    %3 = tpu.iota {dimensions = array<i32: 0>} : vector<4x1xi32>
    %4 = vector.broadcast %2 : i32 to vector<4x1xi32>
    %5 = arith.addi %4, %3 : vector<4x1xi32>
    %c4_i32_3 = arith.constant 4 : i32
    %6 = vector.broadcast %c4_i32_3 : i32 to vector<4x1xi32>
    %7 = arith.cmpi slt, %5, %6 : vector<4x1xi32>
    %cst = arith.constant dense<0xFF800000> : vector<4xf32>
    %8 = vector.multi_reduction <maximumf>, %0, %cst [1] : vector<4x128xf32> to vector<4xf32>
    %9 = vector.shape_cast %8 : vector<4xf32> to vector<4x1xf32>
    %10 = vector.broadcast %9 : vector<4x1xf32> to vector<4x128xf32>
    %11 = arith.subf %0, %10 : vector<4x128xf32>
    %12 = math.exp %11 : vector<4x128xf32>
    %13 = tpu.iota {dimensions = array<i32: 0>} : vector<128x4xi32>
    %14 = tpu.iota {dimensions = array<i32: 1>} : vector<128x4xi32>
    %c32_i32 = arith.constant 32 : i32
    %15 = vector.broadcast %c32_i32 : i32 to vector<128x4xi32>
    %16 = arith.muli %14, %15 : vector<128x4xi32>
    %17 = arith.cmpi sge, %13, %16 : vector<128x4xi32>
    %c32_i32_4 = arith.constant 32 : i32
    %18 = vector.broadcast %c32_i32_4 : i32 to vector<128x4xi32>
    %19 = arith.addi %16, %18 : vector<128x4xi32>
    %20 = arith.cmpi slt, %13, %19 : vector<128x4xi32>
    %21 = arith.andi %17, %20 : vector<128x4xi1>
    %22 = arith.extui %21 : vector<128x4xi1> to vector<128x4xi32>
    %23 = arith.sitofp %22 : vector<128x4xi32> to vector<128x4xf32>
    %cst_5 = arith.constant dense<0.000000e+00> : vector<4x4xf32>
    %24 = tpu.matmul %12, %23, %cst_5 {dimension_numbers = #tpu.dot_dimension_numbers<[1], [0], [0], [1], [0, 0, 1, 1], [], []>} : vector<4x128xf32>, vector<128x4xf32>, vector<4x4xf32> -> vector<4x4xf32>
    %cst_6 = arith.constant dense<0.000000e+00> : vector<4x4xf32>
    %25 = tpu.matmul %1, %23, %cst_6 {dimension_numbers = #tpu.dot_dimension_numbers<[1], [0], [0], [1], [0, 0, 1, 1], [], []>} : vector<4x128xf32>, vector<128x4xf32>, vector<4x4xf32> -> vector<4x4xf32>
    %26 = math.log %24 : vector<4x4xf32>
    %27 = vector.broadcast %9 : vector<4x1xf32> to vector<4x4xf32>
    %28 = arith.addf %26, %27 : vector<4x4xf32>
    %29 = arith.mulf %28, %25 : vector<4x4xf32>
    %cst_7 = arith.constant 0.000000e+00 : f32
    %30 = vector.shape_cast %7 : vector<4x1xi1> to vector<4x1xi1>
    %31 = vector.broadcast %30 : vector<4x1xi1> to vector<4x4xi1>
    %32 = vector.broadcast %cst_7 : f32 to vector<4x4xf32>
    %33 = arith.select %31, %29, %32 : vector<4x4xi1>, vector<4x4xf32>
    %34 = vector.shape_cast %33 : vector<4x4xf32> to vector<1x4x4xf32>
    %cst_8 = arith.constant dense<0.000000e+00> : vector<1xf32>
    %35 = vector.multi_reduction <add>, %34, %cst_8 [1, 2] : vector<1x4x4xf32> to vector<1xf32>
    %36 = vector.shape_cast %35 : vector<1xf32> to vector<1x1x1xf32>
    %37 = vector.extract %36[0, 0, 0] : f32 from vector<1x1x1xf32>
    %38 = arith.mulf %1, %0 : vector<4x128xf32>
    %cst_9 = arith.constant 0.000000e+00 : f32
    %39 = vector.shape_cast %7 : vector<4x1xi1> to vector<4x1xi1>
    %40 = vector.broadcast %39 : vector<4x1xi1> to vector<4x128xi1>
    %41 = vector.broadcast %cst_9 : f32 to vector<4x128xf32>
    %42 = arith.select %40, %38, %41 : vector<4x128xi1>, vector<4x128xf32>
    %43 = vector.shape_cast %42 : vector<4x128xf32> to vector<1x4x128xf32>
    %cst_10 = arith.constant dense<0.000000e+00> : vector<1xf32>
    %44 = vector.multi_reduction <add>, %43, %cst_10 [1, 2] : vector<1x4x128xf32> to vector<1xf32>
    %45 = vector.shape_cast %44 : vector<1xf32> to vector<1x1x1xf32>
    %46 = vector.extract %45[0, 0, 0] : f32 from vector<1x1x1xf32>
    %47 = arith.subf %37, %46 : f32
    %c0_11 = arith.constant 0 : index
    %c0_12 = arith.constant 0 : index
    %48 = memref.load %arg3[%c0_11, %c0_12] : memref<1x1xf32, #tpu.memory_space<smem>>
    memref.store %47, %arg3[%c0_11, %c0_12] : memref<1x1xf32, #tpu.memory_space<smem>>
    return
  }
  func.func @transform_0(%arg0: i32) -> (i32, i32) {
    %c0_i32 = arith.constant 0 : i32
    %c0_i32_0 = arith.constant 0 : i32
    return %arg0, %c0_i32 : i32, i32
  }
  func.func @transform_1(%arg0: i32) -> (i32, i32) {
    %c0_i32 = arith.constant 0 : i32
    %c0_i32_0 = arith.constant 0 : i32
    return %arg0, %c0_i32 : i32, i32
  }
  func.func @transform_2(%arg0: i32) -> (i32, i32) {
    %c0_i32 = arith.constant 0 : i32
    %c0_i32_0 = arith.constant 0 : i32
    return %arg0, %c0_i32 : i32, i32
  }
}

</mosaic_0001>

<bundles_post_ra>
// kernel: tpu_custom_call.1
= control target key start
LH: loop header
LB: loop body
LE: loop exit
PB: predicated region body
PF: predicated region fallthrough
CT: control target
= control target key end

     0   :  { %7 = vsyncpa [#allocation3], 0  ;;  %s869_s0 = inlined_call_operand.hbm [shape: f32[4,128], index: 0, kind: input, shape index: {}]   ;;  %s870_s1 = inlined_call_operand.hbm [shape: f32[4,128], index: 1, kind: input, shape index: {}]   ;;  %s871_s2 = inlined_call_operand.hbm [shape: f32[1,1], index: 2, kind: output, shape index: {}]  }
   0x1   :  { %8 = vsyncpa [#allocation6], 0 }
   0x2   :  { %9 = vsyncpa [#allocation4], 0  ;;  %s613_s9 = smov [#allocation2]   ;;  %s614_s11 = smov [#allocation5]  }
   0x3   :  { %s16_s10 = sshll.u32 %s613_s9, 4  ;;  %s26_s12 = sshll.u32 %s614_s11, 4  ;;  %s17_s10 = int_to_ptr.vmem [resolvable:$true] %s16_s10  ;;  %s27_s12 = int_to_ptr.vmem [resolvable:$true] %s26_s12 }
   0x4   :  { %s553_s15 = scalar_lea.hbm %s869_s0, 64 }
   0x5   :  { %p554_p0 = scmp.ne.s32.totalorder %s869_s0, %s553_s15  ;;  %p557_p1 = scmp.lt.u32.totalorder %s553_s15, %s869_s0 }
   0x7   :  { %p559_p2 = pnand %p557_p1, %p554_p0 }
   0x9   :  { %562 = shalt.err (!%p559_p2)
}
   0xa   :  { %s563_s20 = scalar_lea.vmem %s17_s10, 64  ;;  %p568_p4 = scmp.lt.s32.totalorder %s17_s10, %s17_s10 }
   0xb   :  { %p564_p3 = scmp.ne.s32.totalorder %s17_s10, %s563_s20  ;;  %p569_p5 = scmp.lt.s32.totalorder %s563_s20, %s563_s20 }
   0xd   :  { %p570_p6 = por %p569_p5, %p568_p4 }
   0xf   :  { %p571_p7 = pnand %p570_p6, %p564_p3 }
  0x11   :  { %574 = shalt.err (!%p571_p7)
}
  0x12   :  { %19 = dma.hbm_to_vmem [thread:$0]  %s869_s0, 64, %s17_s10, [#allocation3]  }
  0x13   :  { %s575_s25 = scalar_lea.hbm %s870_s1, 64 }
  0x14   :  { %p576_p8 = scmp.ne.s32.totalorder %s870_s1, %s575_s25  ;;  %p579_p9 = scmp.lt.u32.totalorder %s575_s25, %s870_s1 }
  0x16   :  { %p581_p10 = pnand %p579_p9, %p576_p8 }
  0x18   :  { %584 = shalt.err (!%p581_p10)
}
  0x19   :  { %s585_s30 = scalar_lea.vmem %s27_s12, 64  ;;  %p590_p12 = scmp.lt.s32.totalorder %s27_s12, %s27_s12 }
  0x1a   :  { %p586_p11 = scmp.ne.s32.totalorder %s27_s12, %s585_s30  ;;  %p591_p13 = scmp.lt.s32.totalorder %s585_s30, %s585_s30 }
  0x1c   :  { %p592_p0 = por %p591_p13, %p590_p12 }
  0x1e   :  { %p593_p1 = pnand %p592_p0, %p586_p11 }
  0x20   :  { %596 = shalt.err (!%p593_p1)
}
  0x21   :  { %29 = dma.hbm_to_vmem [thread:$0]  %s870_s1, 64, %s27_s12, [#allocation6]  }
  0x22   :  { %607 = dma.done.wait [#allocation3], 64  }
  0x23   :  { %608 = vsyncadd [#allocation3], 4294967232 }
  0x24   :  { %609 = dma.done.wait [#allocation6], 64  }
  0x25   :  { %610 = vsyncadd [#allocation6], 4294967232  ;;  %v39_v0 = vlaneseq  ;;  %v615_v1 = vmov 0.0|0.0   ;;  %vm44_vm0 = vcmask 1043456   ;;  %v673_v9 = vld [vmem:[#allocation2] sm:$0xf] }
  0x26   :  { %490 = vmatprep.subr.bf16.mxu0 %v615_v1  ;;  %514 = vmatprep.subr.bf16.mxu1 %v615_v1  ;;  %v45_v10 = vsel %vm44_vm0, %v673_v9, -inf  ;;  %v616_v15 = vmov 1.0|1.0   ;;  %v618_v36 = vmov 0.0   ;;  %v37_v37 = vld [vmem:[#allocation5] sm:$0xf] }
  0x27   :  { %v661_v2 = vshrl.u32 %v39_v0, 7  ;;  %v67_v3 = vand.u32 127, %v39_v0  ;;  %46 = vmax.xlane.f32.xlu0 %v45_v10  ;;  %v308_v42 = vmul.f32 %v37_v37, %v673_v9  ;;  %s597_s8 = scalar_lea.hbm %s871_s2, 16 }
  0x28   :  { %p598_p2 = scmp.ne.s32.totalorder %s871_s2, %s597_s8  ;;  %p601_p3 = scmp.lt.u32.totalorder %s597_s8, %s871_s2 }
  0x29   :  { %v51_v4 = vadd.s32 8, %v661_v2  ;;  %v664_v5 = vmul.u32 32, %v67_v3  ;;  %v52_v6 = vadd.s32 16, %v661_v2  ;;  %v53_v8 = vadd.s32 24, %v661_v2 }
  0x2a   :  { %v54_v11 = vadd.s32 32, %v661_v2  ;;  %v55_v13 = vadd.s32 40, %v661_v2  ;;  %v56_v14 = vadd.s32 48, %v661_v2  ;;  %v57_v17 = vadd.s32 56, %v661_v2  ;;  %p603_p4 = pnand %p601_p3, %p598_p2 }
  0x2b   :  { %vm69_vm1 = vcmp.ge.s32.totalorder %v661_v2, %v664_v5  ;;  %v670_v7 = vadd.s32 32, %v664_v5  ;;  %vm70_vm2 = vcmp.ge.s32.totalorder %v51_v4, %v664_v5  ;;  %vm71_vm6 = vcmp.ge.s32.totalorder %v52_v6, %v664_v5 }
  0x2c   :  { %vm72_vm9 = vcmp.ge.s32.totalorder %v53_v8, %v664_v5  ;;  %vm73_vm13 = vcmp.ge.s32.totalorder %v54_v11, %v664_v5  ;;  %v58_v21 = vadd.s32 64, %v661_v2  ;;  %v59_v22 = vadd.s32 72, %v661_v2 }
  0x2d   :  { %vm86_vm3 = vcmp.lt.s32.totalorder %v661_v2, %v670_v7  ;;  %vm87_vm4 = vcmp.lt.s32.totalorder %v51_v4, %v670_v7  ;;  %vm88_vm7 = vcmp.lt.s32.totalorder %v52_v6, %v670_v7  ;;  %vm89_vm10 = vcmp.lt.s32.totalorder %v53_v8, %v670_v7 }
  0x2e   :  { %vm682_vm5 = vmand %vm69_vm1, %vm86_vm3  ;;  %vm90_vm14 = vcmp.lt.s32.totalorder %v54_v11, %v670_v7  ;;  %vm74_vm1 = vcmp.ge.s32.totalorder %v55_v13, %v664_v5  ;;  %v60_v26 = vadd.s32 80, %v661_v2  ;;  %v61_v27 = vadd.s32 88, %v661_v2 }
  0x2f   :  { %vm103_vm8 = vmand %vm70_vm2, %vm87_vm4  ;;  %vm91_vm2 = vcmp.lt.s32.totalorder %v55_v13, %v670_v7  ;;  %v62_v30 = vadd.s32 96, %v661_v2  ;;  %v63_v31 = vadd.s32 104, %v661_v2  ;;  %v64_v32 = vadd.s32 112, %v661_v2 }
  0x30   :  { %vm491_vm11 = vmpackc.low %vm103_vm8, %vm682_vm5  ;;  %vm75_vm5 = vcmp.ge.s32.totalorder %v56_v14, %v664_v5  ;;  %vm76_vm8 = vcmp.ge.s32.totalorder %v57_v17, %v664_v5  ;;  %v65_v33 = vadd.s32 120, %v661_v2 }
  0x31   :  { %492 = vmatpush3.bf16.msk.msra.mxu0 %vm491_vm11, %v616_v15  ;;  %vm695_vm12 = vmand %vm71_vm6, %vm88_vm7  ;;  %516 = vmatpush3.bf16.msk.msra.mxu1 %vm491_vm11, %v616_v15  ;;  %vm92_vm6 = vcmp.lt.s32.totalorder %v56_v14, %v670_v7 }
  0x32   :  { %493 = vmatprep.subr.bf16.mxu0 %v615_v1  ;;  %vm105_vm15 = vmand %vm72_vm9, %vm89_vm10  ;;  %517 = vmatprep.subr.bf16.mxu1 %v615_v1  ;;  %vm93_vm9 = vcmp.lt.s32.totalorder %v57_v17, %v670_v7 }
  0x33   :  { %vm494_vm3 = vmpackc.low %vm105_vm15, %vm695_vm12  ;;  %vm78_vm15 = vcmp.ge.s32.totalorder %v59_v22, %v664_v5 }
  0x34   :  { %vm709_vm4 = vmand %vm73_vm13, %vm90_vm14  ;;  %vm77_vm14 = vcmp.ge.s32.totalorder %v58_v21, %v664_v5 }
  0x35   :  { %495 = vmatpush3.bf16.msk.msra.mxu0 %vm494_vm3, %v616_v15  ;;  %vm716_vm7 = vmand %vm74_vm1, %vm91_vm2  ;;  %519 = vmatpush3.bf16.msk.msra.mxu1 %vm494_vm3, %v616_v15  ;;  %vm94_vm1 = vcmp.lt.s32.totalorder %v58_v21, %v670_v7  ;;  %vm95_vm2 = vcmp.lt.s32.totalorder %v59_v22, %v670_v7 }
  0x36   :  { %496 = vmatprep.subr.bf16.mxu0 %v615_v1  ;;  %vm497_vm10 = vmpackc.low %vm716_vm7, %vm709_vm4  ;;  %520 = vmatprep.subr.bf16.mxu1 %v615_v1  ;;  %vm80_vm7 = vcmp.ge.s32.totalorder %v61_v27, %v664_v5 }
  0x37   :  { %vm729_vm11 = vmand %vm75_vm5, %vm92_vm6  ;;  %vm79_vm6 = vcmp.ge.s32.totalorder %v60_v26, %v664_v5 }
  0x38   :  { %vm735_vm12 = vmand %vm76_vm8, %vm93_vm9  ;;  %vm96_vm8 = vcmp.lt.s32.totalorder %v60_v26, %v670_v7  ;;  %vm97_vm9 = vcmp.lt.s32.totalorder %v61_v27, %v670_v7 }
  0x39   :  { %498 = vmatpush3.bf16.msk.msra.mxu0 %vm497_vm10, %v616_v15  ;;  %vm500_vm13 = vmpackc.low %vm735_vm12, %vm729_vm11  ;;  %522 = vmatpush3.bf16.msk.msra.mxu1 %vm497_vm10, %v616_v15  ;;  %vm81_vm12 = vcmp.ge.s32.totalorder %v62_v30, %v664_v5 }
  0x3a   :  { %499 = vmatprep.subr.bf16.mxu0 %v615_v1  ;;  %vm749_vm3 = vmand %vm77_vm14, %vm94_vm1  ;;  %523 = vmatprep.subr.bf16.mxu1 %v615_v1  ;;  %vm99_vm1 = vcmp.lt.s32.totalorder %v63_v31, %v670_v7 }
  0x3b   :  { %vm754_vm4 = vmand %vm78_vm15, %vm95_vm2  ;;  %vm98_vm15 = vcmp.lt.s32.totalorder %v62_v30, %v670_v7 }
  0x3c   :  { %vm503_vm5 = vmpackc.low %vm754_vm4, %vm749_vm3 }
  0x3d   :  { %501 = vmatpush3.bf16.msk.msra.mxu0 %vm500_vm13, %v616_v15  ;;  %vm776_vm10 = vmand %vm79_vm6, %vm96_vm8  ;;  %525 = vmatpush3.bf16.msk.msra.mxu1 %vm500_vm13, %v616_v15  ;;  %vm82_vm13 = vcmp.ge.s32.totalorder %v63_v31, %v664_v5  ;;  %vm100_vm8 = vcmp.lt.s32.totalorder %v64_v32, %v670_v7 }
  0x3e   :  { %502 = vmatprep.subr.bf16.mxu0 %v615_v1  ;;  %vm786_vm14 = vmand %vm80_vm7, %vm97_vm9  ;;  %526 = vmatprep.subr.bf16.mxu1 %v615_v1  ;;  %vm83_vm7 = vcmp.ge.s32.totalorder %v64_v32, %v664_v5  ;;  %vm617_vm9 = vmmov 0  }
  0x3f   :  { %vm506_vm11 = vmpackc.low %vm786_vm14, %vm776_vm10  ;;  %452 = vmatprep.mubr.msk.f32.mxu0 %vm617_vm9, %v618_v36  ;;  %487 = vmatprep.mubr.msk.f32.mxu1 %vm617_vm9, %v618_v36  ;;  %vm43_vm10 = vcmp.lt.s32.totalorder %v661_v2, 4  ;;  %vm297_vm14 = vcmask 27648  }
  0x40   :  { %vm810_vm2 = vmand %vm81_vm12, %vm98_vm15  ;;  %vm84_vm12 = vcmp.ge.s32.totalorder %v65_v33, %v664_v5  ;;  %v309_v44 = vsel %vm43_vm10, %v308_v42, 0.0 }
  0x41   :  { %504 = vmatpush3.bf16.msk.msra.mxu0 %vm503_vm5, %v616_v15  ;;  %vm814_vm6 = vmand %vm82_vm13, %vm99_vm1  ;;  %528 = vmatpush3.bf16.msk.msra.mxu1 %vm503_vm5, %v616_v15  ;;  %vm101_vm13 = vcmp.lt.s32.totalorder %v65_v33, %v670_v7  ;;  %v310_v45 = vsel %vm44_vm0, %v309_v44, 0.0 }
  0x42   :  { %505 = vmatprep.subr.bf16.mxu0 %v615_v1  ;;  %529 = vmatprep.subr.bf16.mxu1 %v615_v1  ;;  %vm509_vm3 = vmpackc.low %vm814_vm6, %vm810_vm2 }
  0x43   :  { %vm116_vm4 = vmand %vm83_vm7, %vm100_vm8  ;;  %311 = vadd.xlane.f32.xlu1 %v310_v45 }
  0x44   :  { %vm117_vm5 = vmand %vm84_vm12, %vm101_vm13 }
  0x45   :  { %507 = vmatpush3.bf16.msk.msra.mxu0 %vm506_vm11, %v616_v15  ;;  %531 = vmatpush3.bf16.msk.msra.mxu1 %vm506_vm11, %v616_v15  ;;  %vm512_vm15 = vmpackc.low %vm117_vm5, %vm116_vm4 }
  0x46   :  { %508 = vmatprep.subr.bf16.mxu0 %v615_v1  ;;  %532 = vmatprep.subr.bf16.mxu1 %v615_v1 }
  0x49   :  { %510 = vmatpush3.bf16.msk.msra.mxu0 %vm509_vm3, %v616_v15  ;;  %534 = vmatpush3.bf16.msk.msra.mxu1 %vm509_vm3, %v616_v15 }
  0x4a   :  { %511 = vmatprep.subr.bf16.mxu0 %v615_v1  ;;  %535 = vmatprep.subr.bf16.mxu1 %v615_v1 }
  0x4d   :  { %513 = vmatpush3.bf16.msk.msra.mxu0 %vm512_vm15, %v616_v15  ;;  %537 = vmatpush3.bf16.msk.msra.mxu1 %vm512_vm15, %v616_v15 }
  0x50   :  { %488 = vmatmul.mubr.f32.vlgmr.msra.gmra.mrb[0].mxu1 %v37_v37 }
  0xb4   :  { %v47_v38 = vpop.xlane.xlu0 %46 }
  0xb5   :  { %v48_v39 = vsub.f32 %v673_v9, %v47_v38 }
  0xb7   :  { %v49_v40 = vmul.f32 1.442695, %v48_v39 }
  0xb9   :  { %549 = vpow2.f32 %v49_v40 }
  0xc3   :  { %v550_v41 = vpop.eup %549 }
  0xc4   :  { %453 = vmatmul.mubr.f32.vlgmr.msra.gmra.mrb[0].mxu0 %v550_v41 }
  0xd0   :  { %v312_v55 = vpop.xlane.xlu1 %311 }
  0xd1   :  { %v313_v56 = vrot.slane %v312_v55, 4 }
  0xd3   :  { %v314_v57 = vadd.f32 %v313_v56, %v312_v55 }
  0xd5   :  { %v315_v58 = vrot.slane %v314_v57, 2 }
  0xd7   :  { %v316_v62 = vadd.f32 %v315_v58, %v314_v57 }
  0xd9   :  { %v317_v1 = vrot.slane %v316_v62, 1 }
  0xdb   :  { %v318_v4 = vadd.f32 %v317_v1, %v316_v62 }
 0x123   :  { %v286_v43 = vpop.f32.mrb[0].mxu1 }
 0x124   :  { %v489_v46 = vpop.f32.mrb[1].mxu1 }
 0x197   :  { %v216_v47 = vpop.f32.mrb[0].mxu0 }
 0x198   :  { %551 = vlog2.f32 %v216_v47  ;;  %v454_v48 = vpop.f32.mrb[1].mxu0 }
 0x1a2   :  { %v552_v49 = vpop.eup %551 }
 0x1a3   :  { %v291_v50 = vmul.f32 0.6931472, %v552_v49 }
 0x1a5   :  { %v292_v51 = vadd.f32 %v291_v50, %v47_v38 }
 0x1a7   :  { %v293_v52 = vmul.f32 %v292_v51, %v286_v43 }
 0x1a9   :  { %v296_v53 = vsel %vm43_vm10, %v293_v52, 0.0 }
 0x1aa   :  { %v298_v54 = vsel %vm297_vm14, %v296_v53, 0.0 }
 0x1ab   :  { %299 = vadd.xlane.f32.xlu0 %v298_v54 }
 0x238   :  { %v300_v59 = vpop.xlane.xlu0 %299 }
 0x239   :  { %v301_v60 = vrot.slane %v300_v59, 4 }
 0x23b   :  { %v302_v61 = vadd.f32 %v301_v60, %v300_v59 }
 0x23d   :  { %v303_v63 = vrot.slane %v302_v61, 2 }
 0x23f   :  { %v304_v0 = vadd.f32 %v303_v63, %v302_v61 }
 0x241   :  { %v305_v2 = vrot.slane %v304_v0, 1 }
 0x243   :  { %v306_v3 = vadd.f32 %v305_v2, %v304_v0 }
 0x245   :  { %538 = vpush %v306_v3 }
 0x246   :  { %540 = vpush %v318_v4 }
 0x276   :  { %s539_s1 = spop %538 }
 0x277   :  { %s541_s4 = spop %540 }
 0x278   :  { %s320_s5 = ssub.f32 %s539_s1, %s541_s4 }
 0x27a   :  { %322 = sst [smem:[#allocation7]] %s320_s5 }
 0x27b   :  { %606 = shalt.err (!%p603_p4)
}
 0x27c   :  { %s619_s13 = smov [#allocation7]  }
 0x27d   :  { %330 = dma.smem_to_hbm %s619_s13, 16, %s871_s2, [#allocation4]  }
 0x27e   :  { %611 = dma.done.wait [#allocation4], 16  }
 0x27f   :  { %612 = vsyncadd [#allocation4], 4294967280 }
 0x280   :  { %334 = sfence }
 0x281   :  { %335 = vsyncpa [#allocation3], 1 }
 0x282   :  { %336 = vsyncpa [#allocation6], 1 }
 0x283   :  { %337 = vsyncpa [#allocation4], 1 }

</bundles_post_ra>
